<compile_context>
chip_gen: v5e
topology: v5e:2x2
jax: 0.10.0
libtpu: 0.0.40
codegen_flags: <defaults>
</compile_context>

<pallas_src>
import functools

import jax
import jax.numpy as jnp
from jax.experimental import pallas as pl
from jax.experimental.pallas import tpu as pltpu

BN_EPS = 1e-5
CO_PAD = 8          # Cout (=6) padded to one sublane group
LANE = 128


def _fused_kernel(w_ref, p_ref, o_ref, *, k_gb, n_valid):
    # w_ref : (CO_PAD, K_pad)  conv weight rows; column K = conv bias (pairs with the
    #                          all-ones patch row), columns k_gb / k_gb+1 = BN gamma / beta.
    # p_ref : (K_pad, P_pad)   im2col patches^T; row K is all-ones on valid columns, rest 0.
    # o_ref : (CO_PAD, P_pad)
    #
    # NOTE: BatchNorm statistics are global over all P positions; correct only because the
    # whole problem is a single block.  Do not tile the P axis without switching to a
    # cross-tile two-pass reduction (see VMEM guard in the wrapper).
    y = jnp.dot(w_ref[...], p_ref[...], preferred_element_type=jnp.float32)  # conv + bias
    y = jnp.maximum(y, 0.0)                                                  # ReLU

    # Padded patch columns are all-zero (incl. the bias row) -> y == 0 there, so plain
    # sums with 1/n_valid give exact mean/var.  No masking needed.
    inv_n = 1.0 / float(n_valid)
    s1 = jnp.sum(y, axis=1, keepdims=True)
    s2 = jnp.sum(y * y, axis=1, keepdims=True)
    mean = s1 * inv_n
    var = s2 * inv_n - mean * mean                 # single-pass, biased variance (PyTorch BN)

    gamma = w_ref[:, k_gb:k_gb + 1]                # (CO_PAD, 1)
    beta = w_ref[:, k_gb + 1:k_gb + 2]
    scale = gamma * jax.lax.rsqrt(var + BN_EPS)
    shift = beta - mean * scale
    o_ref[...] = jnp.tanh(y * scale + shift)       # folded BN affine + tanh


def _im2col_T(x, kd, kh, kw):
    """x: (B, Cin, D, H, W) -> patches^T (Cin*kd*kh*kw, Do*Ho*Wo*B); stride 1, VALID.

    Staged windowing (kd + kh + kw = 21 slices).  Stack axes are chosen so the final
    reshape is layout-free: the stacked array is already (Cin, kd, kh, kw, Do, Ho, Wo, B)
    in row-major order -> no big transpose copy.  Row order (Cin, kd, kh, kw) matches
    conv_w.reshape(Cout, -1); column order is (Do, Ho, Wo, B).
    """
    B, Cin, D, H, W = x.shape
    Do, Ho, Wo = D - kd + 1, H - kh + 1, W - kw + 1
    xt = jnp.transpose(x, (1, 2, 3, 4, 0))                                   # (Cin,D,H,W,B) ~40KiB
    xd = jnp.stack([xt[:, i:i + Do] for i in range(kd)], axis=1)             # (Cin,kd,Do,H,W,B)
    xdh = jnp.stack([xd[:, :, :, j:j + Ho] for j in range(kh)], axis=2)      # (Cin,kd,kh,Do,Ho,W,B)
    xdhw = jnp.stack([xdh[:, :, :, :, :, k:k + Wo] for k in range(kw)], axis=3)
    # (Cin,kd,kh,kw,Do,Ho,Wo,B) -> reshape is a pure view of the row-major layout.
    pt = xdhw.reshape(Cin * kd * kh * kw, Do * Ho * Wo * B)
    return pt, (B, Do, Ho, Wo)


@functools.partial(jax.jit, static_argnames=("kernel_size",))
def model_tanh_forward(x, conv_w, conv_b, bn_gamma, bn_beta, *, kernel_size=7):
    """x: (B, Cin, D, H, W) float32 -> (B, Cout, Do, Ho, Wo) float32."""
    x = x.astype(jnp.float32)
    kd = kh = kw = kernel_size
    Cout, Cin = conv_w.shape[0], conv_w.shape[1]

    pt, (B, Do, Ho, Wo) = _im2col_T(x, kd, kh, kw)
    K, P = pt.shape
    # Room for the bias row (K) and the gamma/beta columns (K+1, K+2) inside the pad.
    K_pad = ((K + 3 + LANE - 1) // LANE) * LANE
    P_pad = ((P + LANE - 1) // LANE) * LANE

    # patches^T: append the all-ones bias row, then zero-pad -> single fused producer.
    pt_pad = jnp.pad(
        jnp.concatenate([pt, jnp.ones((1, P), jnp.float32)], axis=0),
        ((0, K_pad - (K + 1)), (0, P_pad - P)))

    # Weight matrix: conv weights | bias | gamma | beta, zero-padded to (CO_PAD, K_pad).
    w_mat = conv_w.reshape(Cout, K).astype(jnp.float32)
    extras = jnp.stack([conv_b, bn_gamma, bn_beta], axis=1).astype(jnp.float32)  # (Cout, 3)
    w_pad = jnp.pad(jnp.concatenate([w_mat, extras], axis=1),
                    ((0, CO_PAD - Cout), (0, K_pad - (K + 3))))

    # VMEM budget guard: single-block design, no double buffering (grid-less call).
    vmem_bytes = 4 * (CO_PAD * K_pad + K_pad * P_pad + CO_PAD * P_pad)
    assert vmem_bytes <= 24 * 1024 * 1024, (
        f"single-block kernel needs {vmem_bytes} B VMEM; tile the P axis with a "
        "two-pass BN reduction before scaling batch/spatial size.")

    out_t = pl.pallas_call(
        functools.partial(_fused_kernel, k_gb=K + 1, n_valid=P),
        out_shape=jax.ShapeDtypeStruct((CO_PAD, P_pad), jnp.float32),
        in_specs=[
            pl.BlockSpec(memory_space=pltpu.MemorySpace.VMEM),
            pl.BlockSpec(memory_space=pltpu.MemorySpace.VMEM),
        ],
        out_specs=pl.BlockSpec(memory_space=pltpu.MemorySpace.VMEM),
        compiler_params=pltpu.CompilerParams(vmem_limit_bytes=32 * 1024 * 1024),
    )(w_pad, pt_pad)

    # (CO_PAD, P_pad) -> (B, Cout, Do, Ho, Wo); padded columns hold tanh(shift) garbage
    # and are sliced off here -- do not consume out_t directly.
    out = (out_t[:Cout, :P]
           .reshape(Cout, Do, Ho, Wo, B)
           .transpose(4, 0, 1, 2, 3))
    return out


if __name__ == "__main__":
    key = jax.random.PRNGKey(0)
    k_x, k_w, k_b = jax.random.split(key, 3)

    B, Cin, D, H, W = 2, 5, 10, 10, 10
    Cout, ksize = 6, 7

    x = jax.random.normal(k_x, (B, Cin, D, H, W), dtype=jnp.float32)

    # Deterministic parameter init (PyTorch-like uniform(-bound, bound) for conv, ones/zeros for BN).
    fan_in = Cin * ksize * ksize * ksize
    bound = 1.0 / (float(fan_in) ** 0.5)
    conv_w = jax.random.uniform(k_w, (Cout, Cin, ksize, ksize, ksize),
                                dtype=jnp.float32, minval=-bound, maxval=bound)
    conv_b = jax.random.uniform(k_b, (Cout,), dtype=jnp.float32,
                                minval=-bound, maxval=bound)
    bn_gamma = jnp.ones((Cout,), dtype=jnp.float32)
    bn_beta = jnp.zeros((Cout,), dtype=jnp.float32)

    out = model_tanh_forward(x, conv_w, conv_b, bn_gamma, bn_beta, kernel_size=ksize)
    jax.block_until_ready(out)

    Do = D - ksize + 1
    assert out.shape == (B, Cout, Do, Do, Do)
    assert bool(jnp.all(jnp.isfinite(out)))

    # Pure-JAX reference (same sanitized semantics) for a correctness spot-check.
    ref = jax.lax.conv_general_dilated(
        x, conv_w, window_strides=(1, 1, 1), padding="VALID",
        dimension_numbers=("NCDHW", "OIDHW", "NCDHW"),
        precision=jax.lax.Precision.HIGHEST)
    ref = ref + conv_b.reshape(1, Cout, 1, 1, 1)
    ref = jnp.maximum(ref, 0.0)
    mean = ref.mean(axis=(0, 2, 3, 4), keepdims=True)
    var = ref.var(axis=(0, 2, 3, 4), keepdims=True)
    ref = (ref - mean) * jax.lax.rsqrt(var + BN_EPS)
    ref = jnp.tanh(ref * bn_gamma.reshape(1, Cout, 1, 1, 1) + bn_beta.reshape(1, Cout, 1, 1, 1))
    assert bool(jnp.allclose(out, ref, atol=5e-4, rtol=5e-4)), float(jnp.max(jnp.abs(out - ref)))

    print("KERNEL_OK")
</pallas_src>

<mosaic_0001>
module attributes {stable_mosaic.version = 11 : i64} {
  func.func @_fused_kernel(%arg0: memref<8x1792xf32, #tpu.memory_space<vmem>>, %arg1: memref<1792x128xf32, #tpu.memory_space<vmem>>, %arg2: memref<8x128xf32, #tpu.memory_space<vmem>>) attributes {dimension_semantics = [], scalar_prefetch = 0 : i64, scratch_operands = 0 : i64, tpu.core_type = #tpu.core_type<tc>} {
    %c0 = arith.constant 0 : index
    %c0_0 = arith.constant 0 : index
    %0 = vector.load %arg0[%c0, %c0_0] : memref<8x1792xf32, #tpu.memory_space<vmem>>, vector<8x1792xf32>
    %c0_1 = arith.constant 0 : index
    %c0_2 = arith.constant 0 : index
    %1 = vector.load %arg1[%c0_1, %c0_2] : memref<1792x128xf32, #tpu.memory_space<vmem>>, vector<1792x128xf32>
    %cst = arith.constant dense<0.000000e+00> : vector<8x128xf32>
    %2 = tpu.matmul %0, %1, %cst {dimension_numbers = #tpu.dot_dimension_numbers<[1], [0], [0], [1], [0, 0, 1, 1], [], []>} : vector<8x1792xf32>, vector<1792x128xf32>, vector<8x128xf32> -> vector<8x128xf32>
    %cst_3 = arith.constant 0.000000e+00 : f32
    %3 = vector.broadcast %cst_3 : f32 to vector<8x128xf32>
    %4 = arith.maximumf %2, %3 : vector<8x128xf32>
    %cst_4 = arith.constant dense<0.000000e+00> : vector<8xf32>
    %5 = vector.multi_reduction <add>, %4, %cst_4 [1] : vector<8x128xf32> to vector<8xf32>
    %6 = vector.shape_cast %5 : vector<8xf32> to vector<8x1xf32>
    %7 = arith.mulf %4, %4 : vector<8x128xf32>
    %cst_5 = arith.constant dense<0.000000e+00> : vector<8xf32>
    %8 = vector.multi_reduction <add>, %7, %cst_5 [1] : vector<8x128xf32> to vector<8xf32>
    %9 = vector.shape_cast %8 : vector<8xf32> to vector<8x1xf32>
    %cst_6 = arith.constant 7.812500e-03 : f32
    %10 = vector.broadcast %cst_6 : f32 to vector<8x1xf32>
    %11 = arith.mulf %6, %10 : vector<8x1xf32>
    %cst_7 = arith.constant 7.812500e-03 : f32
    %12 = vector.broadcast %cst_7 : f32 to vector<8x1xf32>
    %13 = arith.mulf %9, %12 : vector<8x1xf32>
    %14 = arith.mulf %11, %11 : vector<8x1xf32>
    %15 = arith.subf %13, %14 : vector<8x1xf32>
    %c0_8 = arith.constant 0 : index
    %c1716 = arith.constant 1716 : index
    %16 = vector.load %arg0[%c0_8, %c1716] : memref<8x1792xf32, #tpu.memory_space<vmem>>, vector<8x1xf32>
    %c0_9 = arith.constant 0 : index
    %c1717 = arith.constant 1717 : index
    %17 = vector.load %arg0[%c0_9, %c1717] : memref<8x1792xf32, #tpu.memory_space<vmem>>, vector<8x1xf32>
    %cst_10 = arith.constant 9.99999974E-6 : f32
    %18 = vector.broadcast %cst_10 : f32 to vector<8x1xf32>
    %19 = arith.addf %15, %18 : vector<8x1xf32>
    %20 = math.rsqrt %19 : vector<8x1xf32>
    %21 = arith.mulf %16, %20 : vector<8x1xf32>
    %22 = arith.mulf %11, %21 : vector<8x1xf32>
    %23 = arith.subf %17, %22 : vector<8x1xf32>
    %24 = vector.broadcast %21 : vector<8x1xf32> to vector<8x128xf32>
    %25 = arith.mulf %4, %24 : vector<8x128xf32>
    %26 = vector.broadcast %23 : vector<8x1xf32> to vector<8x128xf32>
    %27 = arith.addf %25, %26 : vector<8x128xf32>
    %28 = math.tanh %27 : vector<8x128xf32>
    %c0_11 = arith.constant 0 : index
    %c0_12 = arith.constant 0 : index
    %29 = vector.load %arg2[%c0_11, %c0_12] : memref<8x128xf32, #tpu.memory_space<vmem>>, vector<8x128xf32>
    tpu.vector_store %arg2[%c0_11, %c0_12], %28 {strides = array<i32>} : memref<8x128xf32, #tpu.memory_space<vmem>>, vector<8x128xf32>,
    return
  }
}

</mosaic_0001>

<bundles_post_ra>
// kernel: model_tanh_forward.1
= control target key start
LH: loop header
LB: loop body
LE: loop exit
PB: predicated region body
PF: predicated region fallthrough
CT: control target
= control target key end

     0   :  { %s1325_s1 = inlined_call_operand.vmem [shape: f32[1792,128], index: 1, kind: input, shape index: {}]   ;;  %s1326_s0 = inlined_call_operand.vmem [shape: f32[8,1792], index: 0, kind: input, shape index: {}]   ;;  %s1327_s2 = inlined_call_operand.vmem [shape: f32[8,128], index: 2, kind: output, shape index: {}]  }
   0x1   :  { %v40_v0 = vld [vmem:[%s1325_s1 + $0x78] sm:$0xff]  ;;  %v39_v2 = vld [vmem:[%s1325_s1 + $0x70] sm:$0xff]  ;;  %v38_v6 = vld [vmem:[%s1325_s1 + $0x68] sm:$0xff] }
   0x2   :  { %v72_v1 = vld [vmem:[%s1325_s1 + $0x178] sm:$0xff]  ;;  %249 = vmatpush.msra.mxu0 %v40_v0  ;;  %v71_v4 = vld [vmem:[%s1325_s1 + $0x170] sm:$0xff]  ;;  %v70_v8 = vld [vmem:[%s1325_s1 + $0x168] sm:$0xff] }
   0x3   :  { %289 = vmatpush.msra.mxu2 %v72_v1  ;;  %v56_v3 = vld [vmem:[%s1325_s1 + $0xf8] sm:$0xff]  ;;  %v55_v7 = vld [vmem:[%s1325_s1 + $0xf0] sm:$0xff]  ;;  %v54_v10 = vld [vmem:[%s1325_s1 + $0xe8] sm:$0xff] }
   0x4   :  { %v88_v5 = vld [vmem:[%s1325_s1 + $0x1f8] sm:$0xff]  ;;  %269 = vmatpush.msra.mxu1 %v56_v3  ;;  %250 = vmatpush.msra.mxu0 %v39_v2  ;;  %v87_v9 = vld [vmem:[%s1325_s1 + $0x1f0] sm:$0xff]  ;;  %v37_v11 = vld [vmem:[%s1325_s1 + $0x60] sm:$0xff] }
   0x5   :  { %309 = vmatpush.msra.mxu3 %v88_v5  ;;  %290 = vmatpush.msra.mxu2 %v71_v4  ;;  %v69_v12 = vld [vmem:[%s1325_s1 + $0x160] sm:$0xff]  ;;  %v86_v13 = vld [vmem:[%s1325_s1 + $0x1e8] sm:$0xff]  ;;  %v36_v16 = vld [vmem:[%s1325_s1 + $0x58] sm:$0xff] }
   0x6   :  { %270 = vmatpush.msra.mxu1 %v55_v7  ;;  %251 = vmatpush.msra.mxu0 %v38_v6  ;;  %v53_v14 = vld [vmem:[%s1325_s1 + $0xe0] sm:$0xff]  ;;  %v68_v17 = vld [vmem:[%s1325_s1 + $0x158] sm:$0xff]  ;;  %v35_v20 = vld [vmem:[%s1325_s1 + $0x50] sm:$0xff] }
   0x7   :  { %310 = vmatpush.msra.mxu3 %v87_v9  ;;  %291 = vmatpush.msra.mxu2 %v70_v8  ;;  %v85_v15 = vld [vmem:[%s1325_s1 + $0x1e0] sm:$0xff]  ;;  %v52_v18 = vld [vmem:[%s1325_s1 + $0xd8] sm:$0xff]  ;;  %v67_v21 = vld [vmem:[%s1325_s1 + $0x150] sm:$0xff] }
   0x8   :  { %271 = vmatpush.msra.mxu1 %v54_v10  ;;  %252 = vmatpush.msra.mxu0 %v37_v11  ;;  %v84_v19 = vld [vmem:[%s1325_s1 + $0x1d8] sm:$0xff]  ;;  %v51_v22 = vld [vmem:[%s1325_s1 + $0xd0] sm:$0xff]  ;;  %v34_v24 = vld [vmem:[%s1325_s1 + $0x48] sm:$0xff] }
   0x9   :  { %311 = vmatpush.msra.mxu3 %v86_v13  ;;  %292 = vmatpush.msra.mxu2 %v69_v12  ;;  %v83_v23 = vld [vmem:[%s1325_s1 + $0x1d0] sm:$0xff]  ;;  %v66_v25 = vld [vmem:[%s1325_s1 + $0x148] sm:$0xff]  ;;  %v33_v28 = vld [vmem:[%s1325_s1 + $0x40] sm:$0xff] }
   0xa   :  { %272 = vmatpush.msra.mxu1 %v53_v14  ;;  %253 = vmatpush.msra.mxu0 %v36_v16  ;;  %v50_v26 = vld [vmem:[%s1325_s1 + $0xc8] sm:$0xff]  ;;  %v65_v29 = vld [vmem:[%s1325_s1 + $0x140] sm:$0xff]  ;;  %v32_v32 = vld [vmem:[%s1325_s1 + $0x38] sm:$0xff] }
   0xb   :  { %312 = vmatpush.msra.mxu3 %v85_v15  ;;  %293 = vmatpush.msra.mxu2 %v68_v17  ;;  %v82_v27 = vld [vmem:[%s1325_s1 + $0x1c8] sm:$0xff]  ;;  %v49_v30 = vld [vmem:[%s1325_s1 + $0xc0] sm:$0xff]  ;;  %v64_v33 = vld [vmem:[%s1325_s1 + $0x138] sm:$0xff] }
   0xc   :  { %273 = vmatpush.msra.mxu1 %v52_v18  ;;  %254 = vmatpush.msra.mxu0 %v35_v20  ;;  %v81_v31 = vld [vmem:[%s1325_s1 + $0x1c0] sm:$0xff]  ;;  %v48_v34 = vld [vmem:[%s1325_s1 + $0xb8] sm:$0xff]  ;;  %v31_v36 = vld [vmem:[%s1325_s1 + $0x30] sm:$0xff] }
   0xd   :  { %313 = vmatpush.msra.mxu3 %v84_v19  ;;  %294 = vmatpush.msra.mxu2 %v67_v21  ;;  %v80_v35 = vld [vmem:[%s1325_s1 + $0x1b8] sm:$0xff]  ;;  %v63_v37 = vld [vmem:[%s1325_s1 + $0x130] sm:$0xff]  ;;  %v30_v40 = vld [vmem:[%s1325_s1 + $0x28] sm:$0xff] }
   0xe   :  { %274 = vmatpush.msra.mxu1 %v51_v22  ;;  %255 = vmatpush.msra.mxu0 %v34_v24  ;;  %v47_v38 = vld [vmem:[%s1325_s1 + $0xb0] sm:$0xff]  ;;  %v62_v41 = vld [vmem:[%s1325_s1 + $0x128] sm:$0xff]  ;;  %v29_v44 = vld [vmem:[%s1325_s1 + $0x20] sm:$0xff] }
   0xf   :  { %314 = vmatpush.msra.mxu3 %v83_v23  ;;  %295 = vmatpush.msra.mxu2 %v66_v25  ;;  %v79_v39 = vld [vmem:[%s1325_s1 + $0x1b0] sm:$0xff]  ;;  %v46_v42 = vld [vmem:[%s1325_s1 + $0xa8] sm:$0xff]  ;;  %v61_v45 = vld [vmem:[%s1325_s1 + $0x120] sm:$0xff] }
  0x10   :  { %275 = vmatpush.msra.mxu1 %v50_v26  ;;  %256 = vmatpush.msra.mxu0 %v33_v28  ;;  %v78_v43 = vld [vmem:[%s1325_s1 + $0x1a8] sm:$0xff]  ;;  %v45_v46 = vld [vmem:[%s1325_s1 + $0xa0] sm:$0xff]  ;;  %v28_v48 = vld [vmem:[%s1325_s1 + $0x18] sm:$0xff] }
  0x11   :  { %315 = vmatpush.msra.mxu3 %v82_v27  ;;  %296 = vmatpush.msra.mxu2 %v65_v29  ;;  %v77_v47 = vld [vmem:[%s1325_s1 + $0x1a0] sm:$0xff]  ;;  %v60_v49 = vld [vmem:[%s1325_s1 + $0x118] sm:$0xff]  ;;  %v27_v52 = vld [vmem:[%s1325_s1 + $0x10] sm:$0xff] }
  0x12   :  { %276 = vmatpush.msra.mxu1 %v49_v30  ;;  %257 = vmatpush.msra.mxu0 %v32_v32  ;;  %v44_v50 = vld [vmem:[%s1325_s1 + $0x98] sm:$0xff]  ;;  %v59_v53 = vld [vmem:[%s1325_s1 + $0x110] sm:$0xff]  ;;  %v26_v56 = vld [vmem:[%s1325_s1 + $0x8] sm:$0xff] }
  0x13   :  { %316 = vmatpush.msra.mxu3 %v81_v31  ;;  %297 = vmatpush.msra.mxu2 %v64_v33  ;;  %v76_v51 = vld [vmem:[%s1325_s1 + $0x198] sm:$0xff]  ;;  %v43_v54 = vld [vmem:[%s1325_s1 + $0x90] sm:$0xff]  ;;  %v58_v57 = vld [vmem:[%s1325_s1 + $0x108] sm:$0xff] }
  0x14   :  { %277 = vmatpush.msra.mxu1 %v48_v34  ;;  %258 = vmatpush.msra.mxu0 %v31_v36  ;;  %v75_v55 = vld [vmem:[%s1325_s1 + $0x190] sm:$0xff]  ;;  %v42_v58 = vld [vmem:[%s1325_s1 + $0x88] sm:$0xff]  ;;  %v25_v60 = vld [vmem:[%s1325_s1] sm:$0xff] }
  0x15   :  { %317 = vmatpush.msra.mxu3 %v80_v35  ;;  %298 = vmatpush.msra.mxu2 %v63_v37  ;;  %v74_v59 = vld [vmem:[%s1325_s1 + $0x188] sm:$0xff]  ;;  %v57_v61 = vld [vmem:[%s1325_s1 + $0x100] sm:$0xff]  ;;  %v104_v62 = vld [vmem:[%s1325_s1 + $0x278] sm:$0xff] }
  0x16   :  { %278 = vmatpush.msra.mxu1 %v47_v38  ;;  %259 = vmatpush.msra.mxu0 %v30_v40  ;;  %v136_v63 = vld [vmem:[%s1325_s1 + $0x378] sm:$0xff]  ;;  %v41_v0 = vld [vmem:[%s1325_s1 + $0x80] sm:$0xff]  ;;  %v103_v2 = vld [vmem:[%s1325_s1 + $0x270] sm:$0xff] }
  0x17   :  { %318 = vmatpush.msra.mxu3 %v79_v39  ;;  %299 = vmatpush.msra.mxu2 %v62_v41  ;;  %v73_v1 = vld [vmem:[%s1325_s1 + $0x180] sm:$0xff]  ;;  %v120_v3 = vld [vmem:[%s1325_s1 + $0x2f8] sm:$0xff]  ;;  %v135_v4 = vld [vmem:[%s1325_s1 + $0x370] sm:$0xff] }
  0x18   :  { %279 = vmatpush.msra.mxu1 %v46_v42  ;;  %260 = vmatpush.msra.mxu0 %v29_v44  ;;  %v152_v5 = vld [vmem:[%s1325_s1 + $0x3f8] sm:$0xff]  ;;  %v102_v6 = vld [vmem:[%s1325_s1 + $0x268] sm:$0xff]  ;;  %v119_v7 = vld [vmem:[%s1325_s1 + $0x2f0] sm:$0xff] }
  0x19   :  { %319 = vmatpush.msra.mxu3 %v78_v43  ;;  %300 = vmatpush.msra.mxu2 %v61_v45  ;;  %v134_v8 = vld [vmem:[%s1325_s1 + $0x368] sm:$0xff]  ;;  %v151_v9 = vld [vmem:[%s1325_s1 + $0x3f0] sm:$0xff]  ;;  %v101_v10 = vld [vmem:[%s1325_s1 + $0x260] sm:$0xff] }
  0x1a   :  { %280 = vmatpush.msra.mxu1 %v45_v46  ;;  %261 = vmatpush.msra.mxu0 %v28_v48  ;;  %v118_v11 = vld [vmem:[%s1325_s1 + $0x2e8] sm:$0xff]  ;;  %v133_v12 = vld [vmem:[%s1325_s1 + $0x360] sm:$0xff]  ;;  %v100_v14 = vld [vmem:[%s1325_s1 + $0x258] sm:$0xff] }
  0x1b   :  { %320 = vmatpush.msra.mxu3 %v77_v47  ;;  %301 = vmatpush.msra.mxu2 %v60_v49  ;;  %v150_v13 = vld [vmem:[%s1325_s1 + $0x3e8] sm:$0xff]  ;;  %v117_v15 = vld [vmem:[%s1325_s1 + $0x2e0] sm:$0xff]  ;;  %v132_v16 = vld [vmem:[%s1325_s1 + $0x358] sm:$0xff] }
  0x1c   :  { %281 = vmatpush.msra.mxu1 %v44_v50  ;;  %262 = vmatpush.msra.mxu0 %v27_v52  ;;  %v149_v17 = vld [vmem:[%s1325_s1 + $0x3e0] sm:$0xff]  ;;  %v99_v18 = vld [vmem:[%s1325_s1 + $0x250] sm:$0xff]  ;;  %v116_v19 = vld [vmem:[%s1325_s1 + $0x2d8] sm:$0xff] }
  0x1d   :  { %321 = vmatpush.msra.mxu3 %v76_v51  ;;  %302 = vmatpush.msra.mxu2 %v59_v53  ;;  %v131_v20 = vld [vmem:[%s1325_s1 + $0x350] sm:$0xff]  ;;  %v148_v21 = vld [vmem:[%s1325_s1 + $0x3d8] sm:$0xff]  ;;  %v98_v22 = vld [vmem:[%s1325_s1 + $0x248] sm:$0xff] }
  0x1e   :  { %282 = vmatpush.msra.mxu1 %v43_v54  ;;  %263 = vmatpush.msra.mxu0 %v26_v56  ;;  %v115_v23 = vld [vmem:[%s1325_s1 + $0x2d0] sm:$0xff]  ;;  %v130_v24 = vld [vmem:[%s1325_s1 + $0x348] sm:$0xff]  ;;  %v97_v26 = vld [vmem:[%s1325_s1 + $0x240] sm:$0xff] }
  0x1f   :  { %322 = vmatpush.msra.mxu3 %v75_v55  ;;  %303 = vmatpush.msra.mxu2 %v58_v57  ;;  %v147_v25 = vld [vmem:[%s1325_s1 + $0x3d0] sm:$0xff]  ;;  %v114_v27 = vld [vmem:[%s1325_s1 + $0x2c8] sm:$0xff]  ;;  %v129_v28 = vld [vmem:[%s1325_s1 + $0x340] sm:$0xff] }
  0x20   :  { %283 = vmatpush.msra.mxu1 %v42_v58  ;;  %264 = vmatpush.msra.mxu0 %v25_v60  ;;  %v146_v29 = vld [vmem:[%s1325_s1 + $0x3c8] sm:$0xff]  ;;  %v96_v30 = vld [vmem:[%s1325_s1 + $0x238] sm:$0xff]  ;;  %v113_v31 = vld [vmem:[%s1325_s1 + $0x2c0] sm:$0xff] }
  0x21   :  { %323 = vmatpush.msra.mxu3 %v74_v59  ;;  %304 = vmatpush.msra.mxu2 %v57_v61  ;;  %v128_v32 = vld [vmem:[%s1325_s1 + $0x338] sm:$0xff]  ;;  %v145_v33 = vld [vmem:[%s1325_s1 + $0x3c0] sm:$0xff]  ;;  %v95_v34 = vld [vmem:[%s1325_s1 + $0x230] sm:$0xff] }
  0x22   :  { %329 = vmatpush.msrb.mxu0 %v104_v62  ;;  %284 = vmatpush.msra.mxu1 %v41_v0  ;;  %v112_v35 = vld [vmem:[%s1325_s1 + $0x2b8] sm:$0xff]  ;;  %v127_v36 = vld [vmem:[%s1325_s1 + $0x330] sm:$0xff]  ;;  %v94_v38 = vld [vmem:[%s1325_s1 + $0x228] sm:$0xff] }
  0x23   :  { %369 = vmatpush.msrb.mxu2 %v136_v63  ;;  %324 = vmatpush.msra.mxu3 %v73_v1  ;;  %v144_v37 = vld [vmem:[%s1325_s1 + $0x3b8] sm:$0xff]  ;;  %v111_v39 = vld [vmem:[%s1325_s1 + $0x2b0] sm:$0xff]  ;;  %v126_v40 = vld [vmem:[%s1325_s1 + $0x328] sm:$0xff] }
  0x24   :  { %330 = vmatpush.msrb.mxu0 %v103_v2  ;;  %349 = vmatpush.msrb.mxu1 %v120_v3  ;;  %v143_v41 = vld [vmem:[%s1325_s1 + $0x3b0] sm:$0xff]  ;;  %v93_v42 = vld [vmem:[%s1325_s1 + $0x220] sm:$0xff]  ;;  %v110_v43 = vld [vmem:[%s1325_s1 + $0x2a8] sm:$0xff] }
  0x25   :  { %370 = vmatpush.msrb.mxu2 %v135_v4  ;;  %389 = vmatpush.msrb.mxu3 %v152_v5  ;;  %v125_v44 = vld [vmem:[%s1325_s1 + $0x320] sm:$0xff]  ;;  %v142_v45 = vld [vmem:[%s1325_s1 + $0x3a8] sm:$0xff]  ;;  %v92_v46 = vld [vmem:[%s1325_s1 + $0x218] sm:$0xff] }
  0x26   :  { %331 = vmatpush.msrb.mxu0 %v102_v6  ;;  %350 = vmatpush.msrb.mxu1 %v119_v7  ;;  %v109_v47 = vld [vmem:[%s1325_s1 + $0x2a0] sm:$0xff]  ;;  %v124_v48 = vld [vmem:[%s1325_s1 + $0x318] sm:$0xff]  ;;  %v91_v50 = vld [vmem:[%s1325_s1 + $0x210] sm:$0xff] }
  0x27   :  { %371 = vmatpush.msrb.mxu2 %v134_v8  ;;  %390 = vmatpush.msrb.mxu3 %v151_v9  ;;  %v141_v49 = vld [vmem:[%s1325_s1 + $0x3a0] sm:$0xff]  ;;  %v108_v51 = vld [vmem:[%s1325_s1 + $0x298] sm:$0xff]  ;;  %v123_v52 = vld [vmem:[%s1325_s1 + $0x310] sm:$0xff] }
  0x28   :  { %332 = vmatpush.msrb.mxu0 %v101_v10  ;;  %351 = vmatpush.msrb.mxu1 %v118_v11  ;;  %v140_v53 = vld [vmem:[%s1325_s1 + $0x398] sm:$0xff]  ;;  %v13_v54 = vld [vmem:[%s1326_s0 + $0x10] sm:$0xff]  ;;  %v90_v55 = vld [vmem:[%s1325_s1 + $0x208] sm:$0xff] }
  0x29   :  { %372 = vmatpush.msrb.mxu2 %v133_v12  ;;  %391 = vmatpush.msrb.mxu3 %v150_v13  ;;  %v107_v56 = vld [vmem:[%s1325_s1 + $0x290] sm:$0xff]  ;;  %v122_v57 = vld [vmem:[%s1325_s1 + $0x308] sm:$0xff]  ;;  %v11_v59 = vld [vmem:[%s1326_s0] sm:$0xff] }
  0x2a   :  { %333 = vmatpush.msrb.mxu0 %v100_v14  ;;  %352 = vmatpush.msrb.mxu1 %v117_v15  ;;  %v139_v58 = vld [vmem:[%s1325_s1 + $0x390] sm:$0xff]  ;;  %v14_v60 = vld [vmem:[%s1326_s0 + $0x18] sm:$0xff]  ;;  %v89_v61 = vld [vmem:[%s1325_s1 + $0x200] sm:$0xff] }
  0x2b   :  { %373 = vmatpush.msrb.mxu2 %v132_v16  ;;  %392 = vmatpush.msrb.mxu3 %v149_v17  ;;  %v106_v62 = vld [vmem:[%s1325_s1 + $0x288] sm:$0xff]  ;;  %v121_v63 = vld [vmem:[%s1325_s1 + $0x300] sm:$0xff]  ;;  %v168_v2 = vld [vmem:[%s1325_s1 + $0x478] sm:$0xff] }
  0x2c   :  { %334 = vmatpush.msrb.mxu0 %v99_v18  ;;  %353 = vmatpush.msrb.mxu1 %v116_v19  ;;  %v138_v0 = vld [vmem:[%s1325_s1 + $0x388] sm:$0xff]  ;;  %v200_v3 = vld [vmem:[%s1325_s1 + $0x578] sm:$0xff]  ;;  %v105_v4 = vld [vmem:[%s1325_s1 + $0x280] sm:$0xff] }
  0x2d   :  { %374 = vmatpush.msrb.mxu2 %v131_v20  ;;  %393 = vmatpush.msrb.mxu3 %v148_v21  ;;  %v12_v1 = vld [vmem:[%s1326_s0 + $0x8] sm:$0xff]  ;;  %v137_v5 = vld [vmem:[%s1325_s1 + $0x380] sm:$0xff]  ;;  %v167_v6 = vld [vmem:[%s1325_s1 + $0x470] sm:$0xff] }
  0x2e   :  { %335 = vmatpush.msrb.mxu0 %v98_v22  ;;  %354 = vmatpush.msrb.mxu1 %v115_v23  ;;  %v184_v7 = vld [vmem:[%s1325_s1 + $0x4f8] sm:$0xff]  ;;  %v199_v8 = vld [vmem:[%s1325_s1 + $0x570] sm:$0xff]  ;;  %v166_v11 = vld [vmem:[%s1325_s1 + $0x468] sm:$0xff] }
  0x2f   :  { %375 = vmatpush.msrb.mxu2 %v130_v24  ;;  %394 = vmatpush.msrb.mxu3 %v147_v25  ;;  %v216_v9 = vld [vmem:[%s1325_s1 + $0x5f8] sm:$0xff]  ;;  %v17_v10 = vld [vmem:[%s1326_s0 + $0x30] sm:$0xff]  ;;  %v198_v13 = vld [vmem:[%s1325_s1 + $0x568] sm:$0xff] }
  0x30   :  { %336 = vmatpush.msrb.mxu0 %v97_v26  ;;  %355 = vmatpush.msrb.mxu1 %v114_v27  ;;  %v183_v12 = vld [vmem:[%s1325_s1 + $0x4f0] sm:$0xff]  ;;  %v15_v15 = vld [vmem:[%s1326_s0 + $0x20] sm:$0xff]  ;;  %v18_v16 = vld [vmem:[%s1326_s0 + $0x38] sm:$0xff] }
  0x31   :  { %376 = vmatpush.msrb.mxu2 %v129_v28  ;;  %395 = vmatpush.msrb.mxu3 %v146_v29  ;;  %v215_v14 = vld [vmem:[%s1325_s1 + $0x5f0] sm:$0xff]  ;;  %v165_v17 = vld [vmem:[%s1325_s1 + $0x460] sm:$0xff]  ;;  %v182_v18 = vld [vmem:[%s1325_s1 + $0x4e8] sm:$0xff] }
  0x32   :  { %337 = vmatpush.msrb.mxu0 %v96_v30  ;;  %356 = vmatpush.msrb.mxu1 %v113_v31  ;;  %v197_v19 = vld [vmem:[%s1325_s1 + $0x560] sm:$0xff]  ;;  %v214_v20 = vld [vmem:[%s1325_s1 + $0x5e8] sm:$0xff]  ;;  %v164_v22 = vld [vmem:[%s1325_s1 + $0x458] sm:$0xff] }
  0x33   :  { %377 = vmatpush.msrb.mxu2 %v128_v32  ;;  %396 = vmatpush.msrb.mxu3 %v145_v33  ;;  %v16_v21 = vld [vmem:[%s1326_s0 + $0x28] sm:$0xff]  ;;  %v181_v23 = vld [vmem:[%s1325_s1 + $0x4e0] sm:$0xff]  ;;  %v196_v24 = vld [vmem:[%s1325_s1 + $0x558] sm:$0xff] }
  0x34   :  { %338 = vmatpush.msrb.mxu0 %v95_v34  ;;  %357 = vmatpush.msrb.mxu1 %v112_v35  ;;  %v213_v25 = vld [vmem:[%s1325_s1 + $0x5e0] sm:$0xff]  ;;  %v163_v26 = vld [vmem:[%s1325_s1 + $0x450] sm:$0xff]  ;;  %v180_v27 = vld [vmem:[%s1325_s1 + $0x4d8] sm:$0xff] }
  0x35   :  { %378 = vmatpush.msrb.mxu2 %v127_v36  ;;  %397 = vmatpush.msrb.mxu3 %v144_v37  ;;  %v195_v28 = vld [vmem:[%s1325_s1 + $0x550] sm:$0xff]  ;;  %v212_v29 = vld [vmem:[%s1325_s1 + $0x5d8] sm:$0xff]  ;;  %v162_v30 = vld [vmem:[%s1325_s1 + $0x448] sm:$0xff] }
  0x36   :  { %339 = vmatpush.msrb.mxu0 %v94_v38  ;;  %358 = vmatpush.msrb.mxu1 %v111_v39  ;;  %v179_v31 = vld [vmem:[%s1325_s1 + $0x4d0] sm:$0xff]  ;;  %v194_v32 = vld [vmem:[%s1325_s1 + $0x548] sm:$0xff]  ;;  %v161_v34 = vld [vmem:[%s1325_s1 + $0x440] sm:$0xff] }
  0x37   :  { %379 = vmatpush.msrb.mxu2 %v126_v40  ;;  %398 = vmatpush.msrb.mxu3 %v143_v41  ;;  %v211_v33 = vld [vmem:[%s1325_s1 + $0x5d0] sm:$0xff]  ;;  %v178_v35 = vld [vmem:[%s1325_s1 + $0x4c8] sm:$0xff]  ;;  %v193_v36 = vld [vmem:[%s1325_s1 + $0x540] sm:$0xff] }
  0x38   :  { %340 = vmatpush.msrb.mxu0 %v93_v42  ;;  %359 = vmatpush.msrb.mxu1 %v110_v43  ;;  %v210_v37 = vld [vmem:[%s1325_s1 + $0x5c8] sm:$0xff]  ;;  %v160_v38 = vld [vmem:[%s1325_s1 + $0x438] sm:$0xff]  ;;  %v177_v39 = vld [vmem:[%s1325_s1 + $0x4c0] sm:$0xff] }
  0x39   :  { %380 = vmatpush.msrb.mxu2 %v125_v44  ;;  %399 = vmatpush.msrb.mxu3 %v142_v45  ;;  %v192_v40 = vld [vmem:[%s1325_s1 + $0x538] sm:$0xff]  ;;  %v209_v41 = vld [vmem:[%s1325_s1 + $0x5c0] sm:$0xff]  ;;  %v159_v42 = vld [vmem:[%s1325_s1 + $0x430] sm:$0xff] }
  0x3a   :  { %341 = vmatpush.msrb.mxu0 %v92_v46  ;;  %360 = vmatpush.msrb.mxu1 %v109_v47  ;;  %v176_v43 = vld [vmem:[%s1325_s1 + $0x4b8] sm:$0xff]  ;;  %v191_v44 = vld [vmem:[%s1325_s1 + $0x530] sm:$0xff]  ;;  %v158_v46 = vld [vmem:[%s1325_s1 + $0x428] sm:$0xff] }
  0x3b   :  { %381 = vmatpush.msrb.mxu2 %v124_v48  ;;  %400 = vmatpush.msrb.mxu3 %v141_v49  ;;  %v208_v45 = vld [vmem:[%s1325_s1 + $0x5b8] sm:$0xff]  ;;  %v175_v47 = vld [vmem:[%s1325_s1 + $0x4b0] sm:$0xff]  ;;  %v190_v48 = vld [vmem:[%s1325_s1 + $0x528] sm:$0xff] }
  0x3c   :  { %342 = vmatpush.msrb.mxu0 %v91_v50  ;;  %361 = vmatpush.msrb.mxu1 %v108_v51  ;;  %v207_v49 = vld [vmem:[%s1325_s1 + $0x5b0] sm:$0xff]  ;;  %v157_v50 = vld [vmem:[%s1325_s1 + $0x420] sm:$0xff]  ;;  %v174_v51 = vld [vmem:[%s1325_s1 + $0x4a8] sm:$0xff] }
  0x3d   :  { %382 = vmatpush.msrb.mxu2 %v123_v52  ;;  %401 = vmatpush.msrb.mxu3 %v140_v53  ;;  %v189_v52 = vld [vmem:[%s1325_s1 + $0x520] sm:$0xff]  ;;  %v206_v53 = vld [vmem:[%s1325_s1 + $0x5a8] sm:$0xff] }
  0x3e   :  { %305 = vmatmul.f32.vlgmr.msra.gmra.mxu2 %v13_v54  ;;  %343 = vmatpush.msrb.mxu0 %v90_v55  ;;  %v156_v54 = vld [vmem:[%s1325_s1 + $0x418] sm:$0xff]  ;;  %v173_v55 = vld [vmem:[%s1325_s1 + $0x4a0] sm:$0xff] }
  0x3f   :  { %362 = vmatpush.msrb.mxu1 %v107_v56  ;;  %383 = vmatpush.msrb.mxu2 %v122_v57  ;;  %v188_v56 = vld [vmem:[%s1325_s1 + $0x518] sm:$0xff]  ;;  %v205_v57 = vld [vmem:[%s1325_s1 + $0x5a0] sm:$0xff] }
  0x40   :  { %402 = vmatpush.msrb.mxu3 %v139_v58  ;;  %265 = vmatmul.f32.vlgmr.msra.gmra.mxu0 %v11_v59  ;;  %v155_v58 = vld [vmem:[%s1325_s1 + $0x410] sm:$0xff]  ;;  %v172_v59 = vld [vmem:[%s1325_s1 + $0x498] sm:$0xff] }
  0x41   :  { %325 = vmatmul.f32.vlgmr.msra.gmra.mxu3 %v14_v60  ;;  %344 = vmatpush.msrb.mxu0 %v89_v61  ;;  %v187_v60 = vld [vmem:[%s1325_s1 + $0x510] sm:$0xff]  ;;  %v204_v61 = vld [vmem:[%s1325_s1 + $0x598] sm:$0xff] }
  0x42   :  { %363 = vmatpush.msrb.mxu1 %v106_v62  ;;  %384 = vmatpush.msrb.mxu2 %v121_v63  ;;  %v154_v62 = vld [vmem:[%s1325_s1 + $0x408] sm:$0xff]  ;;  %v171_v63 = vld [vmem:[%s1325_s1 + $0x490] sm:$0xff] }
  0x43   :  { %403 = vmatpush.msrb.mxu3 %v138_v0  ;;  %285 = vmatmul.f32.vlgmr.msra.gmra.mxu1 %v12_v1  ;;  %v186_v0 = vld [vmem:[%s1325_s1 + $0x508] sm:$0xff]  ;;  %v203_v1 = vld [vmem:[%s1325_s1 + $0x590] sm:$0xff] }
  0x44   :  { %409 = vmatpush.msra.mxu0 %v168_v2  ;;  %449 = vmatpush.msra.mxu2 %v200_v3  ;;  %v153_v2 = vld [vmem:[%s1325_s1 + $0x400] sm:$0xff]  ;;  %v170_v3 = vld [vmem:[%s1325_s1 + $0x488] sm:$0xff] }
  0x45   :  { %364 = vmatpush.msrb.mxu1 %v105_v4  ;;  %404 = vmatpush.msrb.mxu3 %v137_v5  ;;  %v185_v4 = vld [vmem:[%s1325_s1 + $0x500] sm:$0xff]  ;;  %v202_v5 = vld [vmem:[%s1325_s1 + $0x588] sm:$0xff] }
  0x46   :  { %410 = vmatpush.msra.mxu0 %v167_v6  ;;  %450 = vmatpush.msra.mxu2 %v199_v8  ;;  %v19_v6 = vld [vmem:[%s1326_s0 + $0x40] sm:$0xff]  ;;  %v232_v8 = vld [vmem:[%s1325_s1 + $0x678] sm:$0xff] }
  0x47   :  { %429 = vmatpush.msra.mxu1 %v184_v7  ;;  %469 = vmatpush.msra.mxu3 %v216_v9  ;;  %v21_v7 = vld [vmem:[%s1326_s0 + $0x50] sm:$0xff]  ;;  %v169_v9 = vld [vmem:[%s1325_s1 + $0x480] sm:$0xff] }
  0x48   :  { %385 = vmatmul.f32.vlgmr.msrb.gmra.mxu2 %v17_v10  ;;  %411 = vmatpush.msra.mxu0 %v166_v11  ;;  %v201_v10 = vld [vmem:[%s1325_s1 + $0x580] sm:$0xff]  ;;  %v20_v11 = vld [vmem:[%s1326_s0 + $0x48] sm:$0xff] }
  0x49   :  { %430 = vmatpush.msra.mxu1 %v183_v12  ;;  %451 = vmatpush.msra.mxu2 %v198_v13  ;;  %v22_v12 = vld [vmem:[%s1326_s0 + $0x58] sm:$0xff]  ;;  %v231_v13 = vld [vmem:[%s1325_s1 + $0x670] sm:$0xff] }
  0x4a   :  { %470 = vmatpush.msra.mxu3 %v215_v14  ;;  %345 = vmatmul.f32.vlgmr.msrb.gmra.mxu0 %v15_v15  ;;  %v248_v14 = vld [vmem:[%s1325_s1 + $0x6f8] sm:$0xff]  ;;  %v230_v15 = vld [vmem:[%s1325_s1 + $0x668] sm:$0xff] }
  0x4b   :  { %405 = vmatmul.f32.vlgmr.msrb.gmra.mxu3 %v18_v16  ;;  %412 = vmatpush.msra.mxu0 %v165_v17  ;;  %v247_v16 = vld [vmem:[%s1325_s1 + $0x6f0] sm:$0xff]  ;;  %v229_v17 = vld [vmem:[%s1325_s1 + $0x660] sm:$0xff] }
  0x4c   :  { %431 = vmatpush.msra.mxu1 %v182_v18  ;;  %452 = vmatpush.msra.mxu2 %v197_v19  ;;  %v246_v18 = vld [vmem:[%s1325_s1 + $0x6e8] sm:$0xff]  ;;  %v228_v19 = vld [vmem:[%s1325_s1 + $0x658] sm:$0xff] }
  0x4d   :  { %471 = vmatpush.msra.mxu3 %v214_v20  ;;  %365 = vmatmul.f32.vlgmr.msrb.gmra.mxu1 %v16_v21  ;;  %v245_v20 = vld [vmem:[%s1325_s1 + $0x6e0] sm:$0xff]  ;;  %v227_v21 = vld [vmem:[%s1325_s1 + $0x650] sm:$0xff] }
  0x4e   :  { %413 = vmatpush.msra.mxu0 %v164_v22  ;;  %432 = vmatpush.msra.mxu1 %v181_v23  ;;  %v244_v22 = vld [vmem:[%s1325_s1 + $0x6d8] sm:$0xff]  ;;  %v226_v23 = vld [vmem:[%s1325_s1 + $0x648] sm:$0xff] }
  0x4f   :  { %453 = vmatpush.msra.mxu2 %v196_v24  ;;  %472 = vmatpush.msra.mxu3 %v213_v25  ;;  %v243_v24 = vld [vmem:[%s1325_s1 + $0x6d0] sm:$0xff]  ;;  %v225_v25 = vld [vmem:[%s1325_s1 + $0x640] sm:$0xff] }
  0x50   :  { %414 = vmatpush.msra.mxu0 %v163_v26  ;;  %433 = vmatpush.msra.mxu1 %v180_v27  ;;  %v242_v26 = vld [vmem:[%s1325_s1 + $0x6c8] sm:$0xff]  ;;  %v224_v27 = vld [vmem:[%s1325_s1 + $0x638] sm:$0xff] }
  0x51   :  { %454 = vmatpush.msra.mxu2 %v195_v28  ;;  %473 = vmatpush.msra.mxu3 %v212_v29  ;;  %v241_v28 = vld [vmem:[%s1325_s1 + $0x6c0] sm:$0xff]  ;;  %v223_v29 = vld [vmem:[%s1325_s1 + $0x630] sm:$0xff] }
  0x52   :  { %415 = vmatpush.msra.mxu0 %v162_v30  ;;  %434 = vmatpush.msra.mxu1 %v179_v31  ;;  %v240_v30 = vld [vmem:[%s1325_s1 + $0x6b8] sm:$0xff]  ;;  %v222_v31 = vld [vmem:[%s1325_s1 + $0x628] sm:$0xff] }
  0x53   :  { %455 = vmatpush.msra.mxu2 %v194_v32  ;;  %474 = vmatpush.msra.mxu3 %v211_v33  ;;  %v239_v32 = vld [vmem:[%s1325_s1 + $0x6b0] sm:$0xff]  ;;  %v221_v33 = vld [vmem:[%s1325_s1 + $0x620] sm:$0xff] }
  0x54   :  { %416 = vmatpush.msra.mxu0 %v161_v34  ;;  %435 = vmatpush.msra.mxu1 %v178_v35  ;;  %v238_v34 = vld [vmem:[%s1325_s1 + $0x6a8] sm:$0xff]  ;;  %v220_v35 = vld [vmem:[%s1325_s1 + $0x618] sm:$0xff] }
  0x55   :  { %456 = vmatpush.msra.mxu2 %v193_v36  ;;  %475 = vmatpush.msra.mxu3 %v210_v37  ;;  %v237_v36 = vld [vmem:[%s1325_s1 + $0x6a0] sm:$0xff]  ;;  %v219_v37 = vld [vmem:[%s1325_s1 + $0x610] sm:$0xff] }
  0x56   :  { %417 = vmatpush.msra.mxu0 %v160_v38  ;;  %436 = vmatpush.msra.mxu1 %v177_v39  ;;  %v236_v38 = vld [vmem:[%s1325_s1 + $0x698] sm:$0xff]  ;;  %v218_v39 = vld [vmem:[%s1325_s1 + $0x608] sm:$0xff] }
  0x57   :  { %457 = vmatpush.msra.mxu2 %v192_v40  ;;  %476 = vmatpush.msra.mxu3 %v209_v41  ;;  %v235_v40 = vld [vmem:[%s1325_s1 + $0x690] sm:$0xff]  ;;  %v217_v41 = vld [vmem:[%s1325_s1 + $0x600] sm:$0xff] }
  0x58   :  { %418 = vmatpush.msra.mxu0 %v159_v42  ;;  %437 = vmatpush.msra.mxu1 %v176_v43  ;;  %v234_v42 = vld [vmem:[%s1325_s1 + $0x688] sm:$0xff]  ;;  %v23_v43 = vld [vmem:[%s1326_s0 + $0x60] sm:$0xff] }
  0x59   :  { %458 = vmatpush.msra.mxu2 %v191_v44  ;;  %477 = vmatpush.msra.mxu3 %v208_v45  ;;  %v233_v44 = vld [vmem:[%s1325_s1 + $0x680] sm:$0xff]  ;;  %v1317_v45 = vld [vmem:[%s1326_s0 + $0x68] sm:$0xff]  ;;  %s586_s0 = smov 1  }
  0x5a   :  { %419 = vmatpush.msra.mxu0 %v158_v46  ;;  %438 = vmatpush.msra.mxu1 %v175_v47 }
  0x5b   :  { %459 = vmatpush.msra.mxu2 %v190_v48  ;;  %478 = vmatpush.msra.mxu3 %v207_v49 }
  0x5c   :  { %420 = vmatpush.msra.mxu0 %v157_v50  ;;  %439 = vmatpush.msra.mxu1 %v174_v51 }
  0x5d   :  { %460 = vmatpush.msra.mxu2 %v189_v52  ;;  %479 = vmatpush.msra.mxu3 %v206_v53 }
  0x5e   :  { %421 = vmatpush.msra.mxu0 %v156_v54  ;;  %440 = vmatpush.msra.mxu1 %v173_v55 }
  0x5f   :  { %461 = vmatpush.msra.mxu2 %v188_v56  ;;  %480 = vmatpush.msra.mxu3 %v205_v57 }
  0x60   :  { %422 = vmatpush.msra.mxu0 %v155_v58  ;;  %441 = vmatpush.msra.mxu1 %v172_v59 }
  0x61   :  { %462 = vmatpush.msra.mxu2 %v187_v60  ;;  %481 = vmatpush.msra.mxu3 %v204_v61 }
  0x62   :  { %423 = vmatpush.msra.mxu0 %v154_v62  ;;  %442 = vmatpush.msra.mxu1 %v171_v63 }
  0x63   :  { %463 = vmatpush.msra.mxu2 %v186_v0  ;;  %482 = vmatpush.msra.mxu3 %v203_v1 }
  0x64   :  { %424 = vmatpush.msra.mxu0 %v153_v2  ;;  %443 = vmatpush.msra.mxu1 %v170_v3 }
  0x65   :  { %464 = vmatpush.msra.mxu2 %v185_v4  ;;  %483 = vmatpush.msra.mxu3 %v202_v5 }
  0x66   :  { %425 = vmatmul.f32.vlgmr.msra.gmra.mxu0 %v19_v6  ;;  %465 = vmatmul.f32.vlgmr.msra.gmra.mxu2 %v21_v7 }
  0x67   :  { %489 = vmatpush.msrb.mxu0 %v232_v8  ;;  %444 = vmatpush.msra.mxu1 %v169_v9 }
  0x68   :  { %484 = vmatpush.msra.mxu3 %v201_v10  ;;  %445 = vmatmul.f32.vlgmr.msra.gmra.mxu1 %v20_v11 }
  0x69   :  { %485 = vmatmul.f32.vlgmr.msra.gmra.mxu3 %v22_v12  ;;  %490 = vmatpush.msrb.mxu0 %v231_v13  ;;  %v585_v13 = vmov 52  }
  0x6a   :  { %509 = vmatpush.msrb.mxu1 %v248_v14  ;;  %578 = vset.pattern.permute.xlu1 %v585_v13 }
  0x6b   :  { %491 = vmatpush.msrb.mxu0 %v230_v15 }
  0x6c   :  { %510 = vmatpush.msrb.mxu1 %v247_v16 }
  0x6d   :  { %492 = vmatpush.msrb.mxu0 %v229_v17 }
  0x6e   :  { %511 = vmatpush.msrb.mxu1 %v246_v18 }
  0x6f   :  { %493 = vmatpush.msrb.mxu0 %v228_v19 }
  0x70   :  { %512 = vmatpush.msrb.mxu1 %v245_v20 }
  0x71   :  { %494 = vmatpush.msrb.mxu0 %v227_v21 }
  0x72   :  { %513 = vmatpush.msrb.mxu1 %v244_v22 }
  0x73   :  { %495 = vmatpush.msrb.mxu0 %v226_v23 }
  0x74   :  { %514 = vmatpush.msrb.mxu1 %v243_v24 }
  0x75   :  { %496 = vmatpush.msrb.mxu0 %v225_v25 }
  0x76   :  { %515 = vmatpush.msrb.mxu1 %v242_v26 }
  0x77   :  { %497 = vmatpush.msrb.mxu0 %v224_v27 }
  0x78   :  { %516 = vmatpush.msrb.mxu1 %v241_v28  ;;  %v587_v28 = vmov 53  }
  0x79   :  { %498 = vmatpush.msrb.mxu0 %v223_v29  ;;  %579 = vset.pattern.permute.xlu2 %v587_v28 }
  0x7a   :  { %517 = vmatpush.msrb.mxu1 %v240_v30  ;;  %580 = vset.pattern.permute.xlu0 %v587_v28 }
  0x7b   :  { %499 = vmatpush.msrb.mxu0 %v222_v31 }
  0x7c   :  { %518 = vmatpush.msrb.mxu1 %v239_v32 }
  0x7d   :  { %500 = vmatpush.msrb.mxu0 %v221_v33 }
  0x7e   :  { %519 = vmatpush.msrb.mxu1 %v238_v34 }
  0x7f   :  { %501 = vmatpush.msrb.mxu0 %v220_v35 }
  0x80   :  { %520 = vmatpush.msrb.mxu1 %v237_v36 }
  0x81   :  { %502 = vmatpush.msrb.mxu0 %v219_v37 }
  0x82   :  { %521 = vmatpush.msrb.mxu1 %v236_v38 }
  0x83   :  { %503 = vmatpush.msrb.mxu0 %v218_v39 }
  0x84   :  { %522 = vmatpush.msrb.mxu1 %v235_v40 }
  0x85   :  { %504 = vmatpush.msrb.mxu0 %v217_v41 }
  0x86   :  { %523 = vmatpush.msrb.mxu1 %v234_v42  ;;  %505 = vmatmul.f32.vlgmr.msrb.gmra.mxu0 %v23_v43 }
  0x88   :  { %524 = vmatpush.msrb.mxu1 %v233_v44 }
  0x89   :  { %525 = vmatmul.f32.vlgmr.msrb.gmra.mxu1 %v1317_v45 }
  0xbd   :  { %v266_v47 = vpop.f32.mrf.mxu0 }
  0xc0   :  { %v286_v46 = vpop.f32.mrf.mxu1 }
  0xc1   :  { %v287_v48 = vadd.f32 %v286_v46, %v266_v47  ;;  %v306_v49 = vpop.f32.mrf.mxu2 }
  0xc3   :  { %v307_v50 = vadd.f32 %v306_v49, %v287_v48 }
  0xc4   :  { %v326_v51 = vpop.f32.mrf.mxu3 }
  0xc5   :  { %v327_v52 = vadd.f32 %v326_v51, %v307_v50 }
  0xc7   :  { %v346_v53 = vpop.f32.mrf.mxu0 }
  0xc8   :  { %v347_v54 = vadd.f32 %v346_v53, %v327_v52 }
  0xca   :  { %v366_v55 = vpop.f32.mrf.mxu1 }
  0xcb   :  { %v367_v56 = vadd.f32 %v366_v55, %v347_v54  ;;  %v386_v57 = vpop.f32.mrf.mxu2 }
  0xcd   :  { %v387_v58 = vadd.f32 %v386_v57, %v367_v56 }
  0xce   :  { %v406_v59 = vpop.f32.mrf.mxu3 }
  0xcf   :  { %v407_v61 = vadd.f32 %v406_v59, %v387_v58 }
  0xe3   :  { %v426_v60 = vpop.f32.mrf.mxu0 }
  0xe4   :  { %v427_v62 = vadd.f32 %v426_v60, %v407_v61 }
  0xe5   :  { %v446_v63 = vpop.f32.mrf.mxu1 }
  0xe6   :  { %v447_v1 = vadd.f32 %v446_v63, %v427_v62 }
  0xe9   :  { %v466_v0 = vpop.f32.mrf.mxu2 }
  0xea   :  { %v467_v2 = vadd.f32 %v466_v0, %v447_v1 }
  0xec   :  { %v486_v3 = vpop.f32.mrf.mxu3 }
  0xed   :  { %v487_v4 = vadd.f32 %v486_v3, %v467_v2 }
 0x103   :  { %v506_v5 = vpop.f32.mrf.mxu0 }
 0x104   :  { %v507_v6 = vadd.f32 %v506_v5, %v487_v4 }
 0x106   :  { %v526_v7 = vpop.f32.mrf.mxu1 }
 0x107   :  { %v527_v8 = vadd.f32 %v526_v7, %v507_v6 }
 0x109   :  { %v529_v9 = vmax.f32 %v527_v8, 0.0 }
 0x10b   :  { %530 = vadd.xlane.f32.xlu0 %v529_v9  ;;  %v532_v10 = vmul.f32 %v529_v9, %v529_v9 }
 0x113   :  { %533 = vadd.xlane.f32.xlu0 %v532_v10 }
 0x17e   :  { %v531_v11 = vpop.xlane.xlu0 %530 }
 0x17f   :  { %v535_v12 = vmul.f32 0.0078125, %v531_v11 }
 0x181   :  { %v537_v15 = vmul.f32 %v535_v12, %v535_v12 }
 0x186   :  { %v534_v14 = vpop.xlane.xlu0 %533 }
 0x187   :  { %v536_v16 = vmul.f32 0.0078125, %v534_v14 }
 0x189   :  { %v538_v17 = vsub.f32 %v536_v16, %v537_v15 }
 0x18b   :  { %v539_v18 = vadd.f32 1e-05, %v538_v17 }
 0x18d   :  { %581 = vrsqrt.f32 %v539_v18  ;;  %vm546_vm1 = vweird.f32 %v539_v18 }
 0x193   :  { %v582_v19 = vpop.eup %581 }
 0x194   :  { %v541_v20 = vmul.f32 %v582_v19, %v539_v18  ;;  %vm547_vm0 = vweird.f32 %v582_v19 }
 0x195   :  { %vm548_vm2 = vmor %vm546_vm1, %vm547_vm0 }
 0x196   :  { %v542_v21 = vmul.f32 %v582_v19, %v541_v20 }
 0x198   :  { %v543_v22 = vmul.f32 0.5, %v542_v21 }
 0x19a   :  { %v544_v23 = vsub.f32 1.5, %v543_v22 }
 0x19c   :  { %v545_v24 = vmul.f32 %v582_v19, %v544_v23 }
 0x19e   :  { %v549_v25 = vsel %vm548_vm2, %v582_v19, %v545_v24 }
 0x19f   :  { %v550_v26 = vmul.f32 %v549_v25, %v1317_v45 }
 0x1a1   :  { %v551_v27 = vmul.f32 %v550_v26, %v535_v12 }
 0x1a3   :  { %553 = vrot.lane.b32.xlu1 %v551_v27, %s586_s0 }
 0x1ab   :  { %559 = vperm.xlu1 %578, %v550_v26  }
 0x215   :  { %v554_v29 = vpop.permute.xlu1 %553 }
 0x216   :  { %v556_v30 = vsub.f32 %v1317_v45, %v554_v29 }
 0x218   :  { %565 = vperm.xlu2 %579, %v556_v30  }
 0x21d   :  { %v560_v31 = vpop.permute.xlu1 %559 }
 0x21e   :  { %v562_v32 = vmul.f32 %v560_v31, %v529_v9 }
 0x272   :  { %v566_v33 = vpop.permute.xlu2 %565 }
 0x273   :  { %v568_v34 = vadd.f32 %v566_v33, %v562_v32 }
 0x275   :  { %583 = vtanh.f32 %v568_v34 }
 0x27b   :  { %v584_v35 = vpop.eup %583 }
 0x27c   :  { %570 = vst [vmem:[%s1327_s2] sm:$0xff] %v584_v35 }

</bundles_post_ra>
